<compile_context>
chip_gen: v5e
topology: v5e:2x2
jax: 0.10.0
libtpu: 0.0.40
codegen_flags: <defaults>
</compile_context>

<pallas_src>
import functools

import jax
import jax.numpy as jnp
from jax.experimental import pallas as pl
from jax.experimental.pallas import tpu as pltpu


LANE = 128
SUBLANE_BF16 = 16          # bf16 packs two rows per sublane -> pad batch to 16
D_ALIGN = 512              # td granularity: keeps x-tile lanes 128-aligned and
                           # w-tile sublanes 16-aligned for bf16
WEIGHT_TILE_BYTES = 12 << 20   # per-buffer bf16 weight tile cap (24 MiB dbl-buf)


def _round_up(x, m):
    return ((x + m - 1) // m) * m


# ---------------------------------------------------------------------------
# Kernel  (grid axis 0 = D-tile index; reduction -> "arbitrary")
# ---------------------------------------------------------------------------
def _linear_accum_kernel(x_ref, w_ref, b_ref, o_ref):
    """o = x @ W + b, accumulated over D-tiles into a resident f32 output.

    x_ref: [Bp, td]    bf16  (D-tile of the flattened, zero-padded input)
    w_ref: [td, N]     bf16  (D-tile of the packed, zero-padded weights)
    b_ref: [1,  N]     f32   (packed bias)
    o_ref: [Bp, N]     f32   (resident accumulator == logits)
    """
    d = pl.program_id(0)

    @pl.when(d == 0)
    def _():
        # Fold the bias into the accumulator init (no separate epilogue pass).
        o_ref[...] = jnp.broadcast_to(b_ref[...], o_ref.shape)

    o_ref[...] += jnp.dot(x_ref[...], w_ref[...],
                          preferred_element_type=jnp.float32)


# ---------------------------------------------------------------------------
# One-time host-side packing (hoist out of the per-forward path)
# ---------------------------------------------------------------------------
def pack_ensemble(weights, biases, mode="mean"):
    """weights: [M, D, K] f32, biases: [M, K] f32 -> packed operands + meta."""
    M, D, K = weights.shape
    Kp = max(LANE, _round_up(K, LANE))            # lane-dense classes

    if mode == "mean":
        n_out = Kp
        # Members are linear: pre-average weights/biases in f32 (exact),
        # round once to bf16 for the MXU stream.
        w_eff = jnp.mean(weights, axis=0)                         # [D, K] f32
        w_eff = jnp.zeros((D, Kp), jnp.float32).at[:, :K].set(w_eff)
        b_eff = jnp.zeros((1, Kp), jnp.float32).at[0, :K].set(
            jnp.mean(biases, axis=0))
    elif mode == "ind":
        n_out = M * Kp
        w_pad = jnp.zeros((M, D, Kp), jnp.float32).at[:, :, :K].set(weights)
        w_eff = jnp.transpose(w_pad, (1, 0, 2)).reshape(D, M * Kp)
        b_eff = jnp.zeros((M, Kp), jnp.float32).at[:, :K].set(
            biases).reshape(1, M * Kp)
    else:
        raise NotImplementedError(mode)

    # D-reduction tile from the VMEM budget, then pad D up to a multiple.
    td_cap = max(D_ALIGN, (WEIGHT_TILE_BYTES // (n_out * 2)) // D_ALIGN * D_ALIGN)
    td = min(td_cap, _round_up(D, D_ALIGN))
    Dp = _round_up(D, td)

    w_packed = jnp.zeros((Dp, n_out), jnp.bfloat16).at[:D, :].set(
        w_eff.astype(jnp.bfloat16))

    return {
        "mode": mode, "M": M, "D": D, "K": K, "Kp": Kp, "n_out": n_out,
        "td": td, "Dp": Dp,
        "w_packed": w_packed, "b_packed": b_eff,
    }


# ---------------------------------------------------------------------------
# Forward (per attack-iteration hot path)
# ---------------------------------------------------------------------------
def ensemble_forward(x_nchw, packed):
    B = x_nchw.shape[0]
    M, D, K, Kp = packed["M"], packed["D"], packed["K"], packed["Kp"]
    td, Dp, n_out = packed["td"], packed["Dp"], packed["n_out"]
    mode = packed["mode"]

    x_flat = x_nchw.reshape(B, -1)
    assert x_flat.shape[1] == D

    Bp = max(SUBLANE_BF16, _round_up(B, SUBLANE_BF16))
    x_pad = jnp.zeros((Bp, Dp), jnp.bfloat16).at[:B, :D].set(
        x_flat.astype(jnp.bfloat16))

    grid = (Dp // td,)
    x_spec = pl.BlockSpec((Bp, td), lambda d: (0, d))
    w_spec = pl.BlockSpec((td, n_out), lambda d: (d, 0))
    b_spec = pl.BlockSpec((1, n_out), lambda d: (0, 0))
    o_spec = pl.BlockSpec((Bp, n_out), lambda d: (0, 0))

    # Explicit scoped-VMEM limit: double-buffered x & w tiles + resident out
    # + bias, with headroom; scoped defaults (16 MiB v5e / 32 MiB v6e,v7x)
    # would otherwise cap the tile size.
    vmem_bytes = (2 * td * n_out * 2          # weight tiles (bf16, dbl-buf)
                  + 2 * Bp * td * 2           # x tiles (bf16, dbl-buf)
                  + 2 * Bp * n_out * 4        # output block (f32)
                  + 2 * 8 * n_out * 4)        # bias block (f32)
    vmem_limit = int(min(max(2 * vmem_bytes, 32 << 20), 48 << 20))

    out = pl.pallas_call(
        _linear_accum_kernel,
        out_shape=jax.ShapeDtypeStruct((Bp, n_out), jnp.float32),
        grid_spec=pltpu.PrefetchScalarGridSpec(
            num_scalar_prefetch=0,
            grid=grid,
            in_specs=[x_spec, w_spec, b_spec],
            out_specs=o_spec,
        ),
        compiler_params=pltpu.CompilerParams(
            dimension_semantics=("arbitrary",),
            vmem_limit_bytes=vmem_limit),
    )(x_pad, packed["w_packed"], packed["b_packed"])

    if mode == "mean":
        return out[:B, :K]
    else:  # 'ind'
        # [Bp, M*Kp] -> [M, B, K]  (torch.stack(outputs, dim=0) layout)
        return out[:B].reshape(B, M, Kp).transpose(1, 0, 2)[:, :, :K]


# ---------------------------------------------------------------------------
# Main
# ---------------------------------------------------------------------------
if __name__ == "__main__":
    # Small shapes: batch=2, channels=4, spatial=16x16, 3 member models,
    # 16 output classes.
    B, C, H, W = 2, 4, 16, 16
    M = 3                    # num_models in the ensemble
    K = 16                   # num classes
    D = C * H * W            # flattened feature dim

    key = jax.random.PRNGKey(0)
    kx, kw, kb = jax.random.split(key, 3)
    x = jax.random.normal(kx, (B, C, H, W), dtype=jnp.float32)
    weights = jax.random.normal(kw, (M, D, K), dtype=jnp.float32) * 0.02
    biases = jax.random.normal(kb, (M, K), dtype=jnp.float32) * 0.01

    # One-time packing (hoisted out of the per-forward path).
    packed_mean = pack_ensemble(weights, biases, mode="mean")
    packed_ind = pack_ensemble(weights, biases, mode="ind")

    # mode='mean' (the hot path)
    out_mean = jax.block_until_ready(ensemble_forward(x, packed_mean))

    # mode='ind' (stacked per-member logits, like torch.stack(outputs, dim=0))
    out_ind = jax.block_until_ready(ensemble_forward(x, packed_ind))

    # References with bf16-rounded operands (same numerics as the MXU path:
    # exact bf16 products, f32 accumulation).
    xb = x.reshape(B, -1).astype(jnp.bfloat16).astype(jnp.float32)
    wb = weights.astype(jnp.bfloat16).astype(jnp.float32)
    ref_ind = jnp.einsum("bd,mdk->mbk", xb, wb) + biases[:, None, :]
    w_mean_b = jnp.mean(weights, axis=0).astype(jnp.bfloat16).astype(jnp.float32)
    ref_mean = xb @ w_mean_b + jnp.mean(biases, axis=0)[None, :]

    assert out_mean.shape == (B, K)
    assert out_ind.shape == (M, B, K)
    assert jnp.allclose(out_mean, ref_mean, atol=2e-3, rtol=2e-3)
    assert jnp.allclose(out_ind, ref_ind, atol=2e-3, rtol=2e-3)
    # Loose sanity check vs the full-f32 PyTorch semantics (bf16 rounding only).
    ref_mean_f32 = jnp.mean(
        jnp.einsum("bd,mdk->mbk", x.reshape(B, -1), weights)
        + biases[:, None, :], axis=0)
    assert jnp.allclose(out_mean, ref_mean_f32, atol=5e-2, rtol=5e-2)

    print("KERNEL_OK")
</pallas_src>

<mosaic_0001>
module attributes {stable_mosaic.version = 11 : i64} {
  func.func @_linear_accum_kernel(%arg0: i32, %arg1: memref<16x1024xbf16, #tpu.memory_space<vmem>>, %arg2: memref<1024x128xbf16, #tpu.memory_space<vmem>>, %arg3: memref<1x128xf32, #tpu.memory_space<vmem>>, %arg4: memref<16x128xf32, #tpu.memory_space<vmem>>) attributes {dimension_semantics = [#tpu.dimension_semantics<arbitrary>], iteration_bounds = array<i64: 1>, scalar_prefetch = 0 : i64, scratch_operands = 0 : i64, tpu.core_type = #tpu.core_type<tc>, window_params = [{transform_indices = @transform_0, window_bounds = array<i64: 16, 1024>}, {transform_indices = @transform_1, window_bounds = array<i64: 1024, 128>}, {pipeline_mode = #tpu.pipeline_mode<synchronous>, transform_indices = @transform_2, window_bounds = array<i64: 1, 128>}, {pipeline_mode = #tpu.pipeline_mode<synchronous>, transform_indices = @transform_3, window_bounds = array<i64: 16, 128>}]} {
    %c0_i32 = arith.constant 0 : i32
    %0 = arith.cmpi eq, %arg0, %c0_i32 : i32
    %1 = arith.extui %0 : i1 to i32
    %c0_i32_0 = arith.constant 0 : i32
    %2 = arith.cmpi ne, %1, %c0_i32_0 : i32
    scf.if %2 {
      %c0_8 = arith.constant 0 : index
      %c0_9 = arith.constant 0 : index
      %9 = vector.load %arg3[%c0_8, %c0_9] : memref<1x128xf32, #tpu.memory_space<vmem>>, vector<1x128xf32>
      %10 = vector.shape_cast %9 : vector<1x128xf32> to vector<1x128xf32>
      %11 = vector.broadcast %10 : vector<1x128xf32> to vector<16x128xf32>
      %c0_10 = arith.constant 0 : index
      %c0_11 = arith.constant 0 : index
      %12 = vector.load %arg4[%c0_10, %c0_11] : memref<16x128xf32, #tpu.memory_space<vmem>>, vector<16x128xf32>
      tpu.vector_store %arg4[%c0_10, %c0_11], %11 {strides = array<i32>} : memref<16x128xf32, #tpu.memory_space<vmem>>, vector<16x128xf32>,
    } else {
    }
    %c0 = arith.constant 0 : index
    %c0_1 = arith.constant 0 : index
    %3 = vector.load %arg4[%c0, %c0_1] : memref<16x128xf32, #tpu.memory_space<vmem>>, vector<16x128xf32>
    %c0_2 = arith.constant 0 : index
    %c0_3 = arith.constant 0 : index
    %4 = vector.load %arg1[%c0_2, %c0_3] : memref<16x1024xbf16, #tpu.memory_space<vmem>>, vector<16x1024xbf16>
    %c0_4 = arith.constant 0 : index
    %c0_5 = arith.constant 0 : index
    %5 = vector.load %arg2[%c0_4, %c0_5] : memref<1024x128xbf16, #tpu.memory_space<vmem>>, vector<1024x128xbf16>
    %cst = arith.constant dense<0.000000e+00> : vector<16x128xf32>
    %6 = tpu.matmul %4, %5, %cst {dimension_numbers = #tpu.dot_dimension_numbers<[1], [0], [0], [1], [0, 0, 1, 1], [], []>} : vector<16x1024xbf16>, vector<1024x128xbf16>, vector<16x128xf32> -> vector<16x128xf32>
    %7 = arith.addf %3, %6 : vector<16x128xf32>
    %c0_6 = arith.constant 0 : index
    %c0_7 = arith.constant 0 : index
    %8 = vector.load %arg4[%c0_6, %c0_7] : memref<16x128xf32, #tpu.memory_space<vmem>>, vector<16x128xf32>
    tpu.vector_store %arg4[%c0_6, %c0_7], %7 {strides = array<i32>} : memref<16x128xf32, #tpu.memory_space<vmem>>, vector<16x128xf32>,
    return
  }
  func.func @transform_0(%arg0: i32) -> (i32, i32) {
    %c0_i32 = arith.constant 0 : i32
    %c0_i32_0 = arith.constant 0 : i32
    return %c0_i32, %arg0 : i32, i32
  }
  func.func @transform_1(%arg0: i32) -> (i32, i32) {
    %c0_i32 = arith.constant 0 : i32
    %c0_i32_0 = arith.constant 0 : i32
    return %arg0, %c0_i32 : i32, i32
  }
  func.func @transform_2(%arg0: i32) -> (i32, i32) {
    %c0_i32 = arith.constant 0 : i32
    %c0_i32_0 = arith.constant 0 : i32
    %c0_i32_1 = arith.constant 0 : i32
    return %c0_i32, %c0_i32_0 : i32, i32
  }
  func.func @transform_3(%arg0: i32) -> (i32, i32) {
    %c0_i32 = arith.constant 0 : i32
    %c0_i32_0 = arith.constant 0 : i32
    %c0_i32_1 = arith.constant 0 : i32
    return %c0_i32, %c0_i32_0 : i32, i32
  }
}

</mosaic_0001>

<bundles_post_ra>
// kernel: tpu_custom_call.1
= control target key start
LH: loop header
LB: loop body
LE: loop exit
PB: predicated region body
PF: predicated region fallthrough
CT: control target
= control target key end

     0   :  { %8 = vsyncpa [#allocation3], 0  ;;  %s1244_s0 = inlined_call_operand.hbm [shape: bf16[16,1024], index: 0, kind: input, shape index: {}]   ;;  %s1245_s1 = inlined_call_operand.hbm [shape: bf16[1024,128], index: 1, kind: input, shape index: {}]   ;;  %s1246_s2 = inlined_call_operand.vmem [shape: f32[1,128], index: 2, kind: input, shape index: {}]   ;;  %s1247_s3 = inlined_call_operand.hbm [shape: f32[16,128], index: 3, kind: output, shape index: {}]  }
   0x1   :  { %9 = vsyncpa [#allocation6], 0 }
   0x2   :  { %10 = vsyncpa [#allocation4], 0  ;;  %s15_s14 = sshll.u32 %s1244_s0, 4  ;;  %s1203_s15 = smov [#allocation2]   ;;  %s16_s14 = int_to_ptr.hbm [resolvable:$true] %s15_s14 }
   0x3   :  { %s17_s16 = sshll.u32 %s1203_s15, 4  ;;  %s28_s19 = sshll.u32 %s1245_s1, 4  ;;  %s18_s16 = int_to_ptr.vmem [resolvable:$true] %s17_s16  ;;  %s29_s19 = int_to_ptr.hbm [resolvable:$true] %s28_s19 }
   0x4   :  { %s1204_s20 = smov 512   ;;  %s1205_s21 = smov 32  }
   0x5   :  { %23 = dma.hbm_to_vmem [thread:$0]  %s16_s14, 1024, %s18_s16, [#allocation3], %s1204_s20, %s1204_s20, %s1205_s21  }
   0x6   :  { %s1206_s22 = smov [#allocation5]   ;;  %s1207_s24 = smov 64  }
   0x7   :  { %s30_s23 = sshll.u32 %s1206_s22, 4  ;;  %s1208_s25 = smov 4   ;;  %s31_s23 = int_to_ptr.vmem [resolvable:$true] %s30_s23 }
   0x8   :  { %36 = dma.hbm_to_vmem [thread:$0]  %s29_s19, 8192, %s31_s23, [#allocation6], %s1207_s24, %s1207_s24, %s1208_s25  }
   0x9   :  { %1197 = dma.done.wait [#allocation3], 1024  }
   0xa   :  { %1198 = vsyncadd [#allocation3], 4294966272 }
   0xb   :  { %1199 = dma.done.wait [#allocation6], 8192  }
   0xc   :  { %1200 = vsyncadd [#allocation6], 4294959104  ;;  %v1058_v0 = vld [vmem:[#allocation5 + $0x38] sm:$0xff]  ;;  %v1057_v4 = vld [vmem:[#allocation5 + $0x30] sm:$0xff]  ;;  %s1209_s26 = smov [#allocation7]   ;;  %s741_s30 = sshll.u32 %s1247_s3, 4  ;;  %s742_s30 = int_to_ptr.hbm [resolvable:$true] %s741_s30 }
   0xd   :  { %v1066_v1 = vld [vmem:[#allocation5 + $0x78] sm:$0xff]  ;;  %619 = vmatpush.bf16.msra.mxu0 %v1058_v0  ;;  %v1065_v5 = vld [vmem:[#allocation5 + $0x70] sm:$0xff]  ;;  %v1056_v8 = vld [vmem:[#allocation5 + $0x28] sm:$0xff]  ;;  %s739_s27 = sshll.u32 %s1209_s26, 4  ;;  %s1211_s4 = smov 8   ;;  %s740_s27 = int_to_ptr.vmem [resolvable:$true] %s739_s27 }
   0xe   :  { %v1074_v2 = vld [vmem:[#allocation5 + $0xb8] sm:$0xff]  ;;  %633 = vmatpush.bf16.msra.mxu1 %v1066_v1  ;;  %v1073_v6 = vld [vmem:[#allocation5 + $0xb0] sm:$0xff]  ;;  %v1064_v9 = vld [vmem:[#allocation5 + $0x68] sm:$0xff] }
   0xf   :  { %v1082_v3 = vld [vmem:[#allocation5 + $0xf8] sm:$0xff]  ;;  %647 = vmatpush.bf16.msra.mxu2 %v1074_v2  ;;  %v1081_v7 = vld [vmem:[#allocation5 + $0xf0] sm:$0xff]  ;;  %v1072_v10 = vld [vmem:[#allocation5 + $0xa8] sm:$0xff] }
  0x10   :  { %661 = vmatpush.bf16.msra.mxu3 %v1082_v3  ;;  %v1080_v11 = vld [vmem:[#allocation5 + $0xe8] sm:$0xff]  ;;  %v1055_v12 = vld [vmem:[#allocation5 + $0x20] sm:$0xff]  ;;  %v1054_v16 = vld [vmem:[#allocation5 + $0x18] sm:$0xff] }
  0x11   :  { %620 = vmatpush.bf16.msra.mxu0 %v1057_v4  ;;  %v1063_v13 = vld [vmem:[#allocation5 + $0x60] sm:$0xff]  ;;  %v1062_v17 = vld [vmem:[#allocation5 + $0x58] sm:$0xff]  ;;  %v1053_v20 = vld [vmem:[#allocation5 + $0x10] sm:$0xff] }
  0x12   :  { %634 = vmatpush.bf16.msra.mxu1 %v1065_v5  ;;  %v1071_v14 = vld [vmem:[#allocation5 + $0xa0] sm:$0xff]  ;;  %v1070_v18 = vld [vmem:[#allocation5 + $0x98] sm:$0xff]  ;;  %v1061_v21 = vld [vmem:[#allocation5 + $0x50] sm:$0xff] }
  0x13   :  { %648 = vmatpush.bf16.msra.mxu2 %v1073_v6  ;;  %v1079_v15 = vld [vmem:[#allocation5 + $0xe0] sm:$0xff]  ;;  %v1078_v19 = vld [vmem:[#allocation5 + $0xd8] sm:$0xff]  ;;  %v1069_v22 = vld [vmem:[#allocation5 + $0x90] sm:$0xff] }
  0x14   :  { %662 = vmatpush.bf16.msra.mxu3 %v1081_v7  ;;  %v1077_v23 = vld [vmem:[#allocation5 + $0xd0] sm:$0xff]  ;;  %v1052_v24 = vld [vmem:[#allocation5 + $0x8] sm:$0xff]  ;;  %v1051_v28 = vld [vmem:[#allocation5] sm:$0xff] }
  0x15   :  { %621 = vmatpush.bf16.msra.mxu0 %v1056_v8  ;;  %v1060_v25 = vld [vmem:[#allocation5 + $0x48] sm:$0xff]  ;;  %v1059_v29 = vld [vmem:[#allocation5 + $0x40] sm:$0xff]  ;;  %v1090_v32 = vld [vmem:[#allocation5 + $0x138] sm:$0xff] }
  0x16   :  { %635 = vmatpush.bf16.msra.mxu1 %v1064_v9  ;;  %v1068_v26 = vld [vmem:[#allocation5 + $0x88] sm:$0xff]  ;;  %v1067_v30 = vld [vmem:[#allocation5 + $0x80] sm:$0xff]  ;;  %v1098_v33 = vld [vmem:[#allocation5 + $0x178] sm:$0xff] }
  0x17   :  { %649 = vmatpush.bf16.msra.mxu2 %v1072_v10  ;;  %v1076_v27 = vld [vmem:[#allocation5 + $0xc8] sm:$0xff]  ;;  %v1075_v31 = vld [vmem:[#allocation5 + $0xc0] sm:$0xff]  ;;  %v1106_v42 = vld [vmem:[#allocation5 + $0x1b8] sm:$0xff] }
  0x18   :  { %663 = vmatpush.bf16.msra.mxu3 %v1080_v11  ;;  %v765_v34 = vld [vmem:[#allocation2 + $0x8] sm:$0xf]  ;;  %v1044_v36 = vld [vmem:[#allocation2 + $0xc] sm:$0xf]  ;;  %v757_v38 = vld [vmem:[#allocation2] sm:$0xf] }
  0x19   :  { %622 = vmatpush.bf16.msra.mxu0 %v1055_v12  ;;  %v1048_v35 = vld [vmem:[#allocation2 + $0x24] sm:$0xf0]  ;;  %v767_v37 = vld [vmem:[#allocation2 + $0x28] sm:$0xf0]  ;;  %v1047_v39 = vld [vmem:[#allocation2 + $0x1c] sm:$0xf0] }
  0x1a   :  { %636 = vmatpush.bf16.msra.mxu1 %v1063_v13  ;;  %v1043_v40 = vld [vmem:[#allocation2 + $0x4] sm:$0xf]  ;;  %v1114_v43 = vld [vmem:[#allocation5 + $0x1f8] sm:$0xff]  ;;  %v766_v44 = vor.u32 %v1048_v35, %v765_v34  ;;  %v770_v45 = vor.u32 %v1044_v36, %v767_v37  ;;  %v758_v46 = vor.u32 %v1047_v39, %v757_v38  ;;  %v1089_v48 = vld [vmem:[#allocation5 + $0x130] sm:$0xff] }
  0x1b   :  { %650 = vmatpush.bf16.msra.mxu2 %v1071_v14  ;;  %v759_v41 = vld [vmem:[#allocation2 + $0x20] sm:$0xf0]  ;;  %v1097_v49 = vld [vmem:[#allocation5 + $0x170] sm:$0xff]  ;;  %v1088_v52 = vld [vmem:[#allocation5 + $0x128] sm:$0xff] }
  0x1c   :  { %664 = vmatpush.bf16.msra.mxu3 %v1079_v15  ;;  %v762_v47 = vor.u32 %v1043_v40, %v759_v41  ;;  %v1105_v50 = vld [vmem:[#allocation5 + $0x1b0] sm:$0xff]  ;;  %v1096_v53 = vld [vmem:[#allocation5 + $0x168] sm:$0xff]  ;;  %v1087_v56 = vld [vmem:[#allocation5 + $0x120] sm:$0xff] }
  0x1d   :  { %623 = vmatpush.bf16.msra.mxu0 %v1054_v16  ;;  %v1113_v51 = vld [vmem:[#allocation5 + $0x1f0] sm:$0xff]  ;;  %v1104_v54 = vld [vmem:[#allocation5 + $0x1a8] sm:$0xff]  ;;  %v1095_v57 = vld [vmem:[#allocation5 + $0x160] sm:$0xff] }
  0x1e   :  { %637 = vmatpush.bf16.msra.mxu1 %v1062_v17  ;;  %v1112_v55 = vld [vmem:[#allocation5 + $0x1e8] sm:$0xff]  ;;  %v1103_v58 = vld [vmem:[#allocation5 + $0x1a0] sm:$0xff]  ;;  %v1086_v60 = vld [vmem:[#allocation5 + $0x118] sm:$0xff] }
  0x1f   :  { %651 = vmatpush.bf16.msra.mxu2 %v1070_v18  ;;  %v1111_v59 = vld [vmem:[#allocation5 + $0x1e0] sm:$0xff]  ;;  %v1094_v61 = vld [vmem:[#allocation5 + $0x158] sm:$0xff]  ;;  %v1085_v0 = vld [vmem:[#allocation5 + $0x110] sm:$0xff] }
  0x20   :  { %665 = vmatpush.bf16.msra.mxu3 %v1078_v19  ;;  %v1102_v62 = vld [vmem:[#allocation5 + $0x198] sm:$0xff]  ;;  %v1093_v1 = vld [vmem:[#allocation5 + $0x150] sm:$0xff]  ;;  %v1084_v4 = vld [vmem:[#allocation5 + $0x108] sm:$0xff] }
  0x21   :  { %624 = vmatpush.bf16.msra.mxu0 %v1053_v20  ;;  %v1110_v63 = vld [vmem:[#allocation5 + $0x1d8] sm:$0xff]  ;;  %v1101_v2 = vld [vmem:[#allocation5 + $0x190] sm:$0xff]  ;;  %v1092_v5 = vld [vmem:[#allocation5 + $0x148] sm:$0xff] }
  0x22   :  { %638 = vmatpush.bf16.msra.mxu1 %v1061_v21  ;;  %v1109_v3 = vld [vmem:[#allocation5 + $0x1d0] sm:$0xff]  ;;  %v1100_v6 = vld [vmem:[#allocation5 + $0x188] sm:$0xff]  ;;  %v1083_v8 = vld [vmem:[#allocation5 + $0x100] sm:$0xff] }
  0x23   :  { %652 = vmatpush.bf16.msra.mxu2 %v1069_v22  ;;  %v1108_v7 = vld [vmem:[#allocation5 + $0x1c8] sm:$0xff]  ;;  %v1091_v9 = vld [vmem:[#allocation5 + $0x140] sm:$0xff]  ;;  %v773_v12 = vld [vmem:[#allocation2 + $0x10] sm:$0xf] }
  0x24   :  { %666 = vmatpush.bf16.msra.mxu3 %v1077_v23  ;;  %v1099_v10 = vld [vmem:[#allocation5 + $0x180] sm:$0xff]  ;;  %v1049_v13 = vld [vmem:[#allocation2 + $0x2c] sm:$0xf0]  ;;  %v1045_v14 = vld [vmem:[#allocation2 + $0x14] sm:$0xf] }
  0x25   :  { %625 = vmatpush.bf16.msra.mxu0 %v1052_v24  ;;  %v1107_v11 = vld [vmem:[#allocation5 + $0x1c0] sm:$0xff]  ;;  %v775_v15 = vld [vmem:[#allocation2 + $0x30] sm:$0xf0]  ;;  %v781_v16 = vld [vmem:[#allocation2 + $0x18] sm:$0xf]  ;;  %v774_v20 = vor.u32 %v1049_v13, %v773_v12 }
  0x26   :  { %639 = vmatpush.bf16.msra.mxu1 %v1060_v25  ;;  %v1050_v17 = vld [vmem:[#allocation2 + $0x34] sm:$0xf0]  ;;  %v1046_v18 = vld [vmem:[#allocation2 + $0x1c] sm:$0xf]  ;;  %v778_v21 = vor.u32 %v1045_v14, %v775_v15 }
  0x27   :  { %653 = vmatpush.bf16.msra.mxu2 %v1068_v26  ;;  %v783_v19 = vld [vmem:[#allocation2 + $0x38] sm:$0xf0]  ;;  %v782_v22 = vor.u32 %v1050_v17, %v781_v16 }
  0x28   :  { %667 = vmatpush.bf16.msra.mxu3 %v1076_v27  ;;  %v786_v23 = vor.u32 %v1046_v18, %v783_v19 }
  0x29   :  { %626 = vmatpush.bf16.msra.mxu0 %v1051_v28 }
  0x2a   :  { %640 = vmatpush.bf16.msra.mxu1 %v1059_v29 }
  0x2b   :  { %654 = vmatpush.bf16.msra.mxu2 %v1067_v30 }
  0x2c   :  { %668 = vmatpush.bf16.msra.mxu3 %v1075_v31  ;;  %627 = vmatmul.bf16.vlgmr.msra.gmra.mxu0 %v758_v46 }
  0x2d   :  { %675 = vmatpush.bf16.msrb.mxu0 %v1090_v32  ;;  %641 = vmatmul.bf16.vlgmr.msra.gmra.mxu1 %v762_v47 }
  0x2e   :  { %689 = vmatpush.bf16.msrb.mxu1 %v1098_v33  ;;  %655 = vmatmul.bf16.vlgmr.msra.gmra.mxu2 %v766_v44 }
  0x2f   :  { %703 = vmatpush.bf16.msrb.mxu2 %v1106_v42  ;;  %669 = vmatmul.bf16.vlgmr.msra.gmra.mxu3 %v770_v45  ;;  %v1124_v45 = vld [vmem:[%s1246_s2] ss:$0 sm:$0xff]  ;;  %s1210_s2 = smov 128  }
  0x30   :  { %717 = vmatpush.bf16.msrb.mxu3 %v1114_v43 }
  0x31   :  { %676 = vmatpush.bf16.msrb.mxu0 %v1089_v48 }
  0x32   :  { %690 = vmatpush.bf16.msrb.mxu1 %v1097_v49 }
  0x33   :  { %704 = vmatpush.bf16.msrb.mxu2 %v1105_v50 }
  0x34   :  { %718 = vmatpush.bf16.msrb.mxu3 %v1113_v51 }
  0x35   :  { %677 = vmatpush.bf16.msrb.mxu0 %v1088_v52 }
  0x36   :  { %691 = vmatpush.bf16.msrb.mxu1 %v1096_v53 }
  0x37   :  { %705 = vmatpush.bf16.msrb.mxu2 %v1104_v54 }
  0x38   :  { %719 = vmatpush.bf16.msrb.mxu3 %v1112_v55 }
  0x39   :  { %678 = vmatpush.bf16.msrb.mxu0 %v1087_v56 }
  0x3a   :  { %692 = vmatpush.bf16.msrb.mxu1 %v1095_v57 }
  0x3b   :  { %706 = vmatpush.bf16.msrb.mxu2 %v1103_v58 }
  0x3c   :  { %720 = vmatpush.bf16.msrb.mxu3 %v1111_v59 }
  0x3d   :  { %679 = vmatpush.bf16.msrb.mxu0 %v1086_v60 }
  0x3e   :  { %693 = vmatpush.bf16.msrb.mxu1 %v1094_v61 }
  0x3f   :  { %707 = vmatpush.bf16.msrb.mxu2 %v1102_v62 }
  0x40   :  { %721 = vmatpush.bf16.msrb.mxu3 %v1110_v63 }
  0x41   :  { %680 = vmatpush.bf16.msrb.mxu0 %v1085_v0 }
  0x42   :  { %694 = vmatpush.bf16.msrb.mxu1 %v1093_v1 }
  0x43   :  { %708 = vmatpush.bf16.msrb.mxu2 %v1101_v2 }
  0x44   :  { %722 = vmatpush.bf16.msrb.mxu3 %v1109_v3 }
  0x45   :  { %681 = vmatpush.bf16.msrb.mxu0 %v1084_v4 }
  0x46   :  { %695 = vmatpush.bf16.msrb.mxu1 %v1092_v5 }
  0x47   :  { %709 = vmatpush.bf16.msrb.mxu2 %v1100_v6 }
  0x48   :  { %723 = vmatpush.bf16.msrb.mxu3 %v1108_v7 }
  0x49   :  { %682 = vmatpush.bf16.msrb.mxu0 %v1083_v8 }
  0x4a   :  { %696 = vmatpush.bf16.msrb.mxu1 %v1091_v9 }
  0x4b   :  { %710 = vmatpush.bf16.msrb.mxu2 %v1099_v10 }
  0x4c   :  { %724 = vmatpush.bf16.msrb.mxu3 %v1107_v11  ;;  %683 = vmatmul.bf16.vlgmr.msrb.gmra.mxu0 %v774_v20 }
  0x4d   :  { %697 = vmatmul.bf16.vlgmr.msrb.gmra.mxu1 %v778_v21 }
  0x4e   :  { %711 = vmatmul.bf16.vlgmr.msrb.gmra.mxu2 %v782_v22 }
  0x4f   :  { %725 = vmatmul.bf16.vlgmr.msrb.gmra.mxu3 %v786_v23 }
  0xa9   :  { %v628_v24 = vpop.f32.mrf.mxu0 }
  0xaa   :  { %v642_v25 = vpop.f32.mrf.mxu1 }
  0xab   :  { %v643_v28 = vadd.f32 %v642_v25, %v628_v24 }
  0xb1   :  { %v656_v26 = vpop.f32.mrf.mxu2  ;;  %v630_v29 = vpop.f32.mrf.mxu0 }
  0xb2   :  { %v670_v27 = vpop.f32.mrf.mxu3  ;;  %v644_v30 = vpop.f32.mrf.mxu1  ;;  %v657_v31 = vadd.f32 %v656_v26, %v643_v28 }
  0xb3   :  { %v645_v35 = vadd.f32 %v644_v30, %v630_v29 }
  0xb4   :  { %v671_v34 = vadd.f32 %v670_v27, %v657_v31 }
  0xb9   :  { %v658_v32 = vpop.f32.mrf.mxu2 }
  0xba   :  { %v672_v33 = vpop.f32.mrf.mxu3  ;;  %v659_v39 = vadd.f32 %v658_v32, %v645_v35 }
  0xbc   :  { %v673_v43 = vadd.f32 %v672_v33, %v659_v39 }
  0xc9   :  { %v684_v36 = vpop.f32.mrf.mxu0 }
  0xca   :  { %v685_v37 = vadd.f32 %v684_v36, %v671_v34  ;;  %v698_v38 = vpop.f32.mrf.mxu1 }
  0xcc   :  { %v699_v40 = vadd.f32 %v698_v38, %v685_v37 }
  0xd1   :  { %v712_v41 = vpop.f32.mrf.mxu2  ;;  %v686_v46 = vpop.f32.mrf.mxu0 }
  0xd2   :  { %v726_v42 = vpop.f32.mrf.mxu3  ;;  %v713_v44 = vadd.f32 %v712_v41, %v699_v40  ;;  %v687_v48 = vadd.f32 %v686_v46, %v673_v43  ;;  %v700_v50 = vpop.f32.mrf.mxu1 }
  0xd4   :  { %v727_v47 = vadd.f32 %v726_v42, %v713_v44  ;;  %v701_v51 = vadd.f32 %v700_v50, %v687_v48 }
  0xd6   :  { %v731_v49 = vadd.f32 %v1124_v45, %v727_v47 }
  0xd8   :  { %733 = vst [vmem:[#allocation7] sm:$0xff] %v731_v49 }
  0xd9   :  { %v714_v52 = vpop.f32.mrf.mxu2 }
  0xda   :  { %v715_v53 = vadd.f32 %v714_v52, %v701_v51  ;;  %v728_v54 = vpop.f32.mrf.mxu3 }
  0xdc   :  { %v729_v55 = vadd.f32 %v728_v54, %v715_v53 }
  0xde   :  { %v732_v56 = vadd.f32 %v1124_v45, %v729_v55 }
  0xe0   :  { %734 = vst [vmem:[#allocation7 + $0x8] sm:$0xff] %v732_v56 }
  0xe1   :  { %747 = dma.vmem_to_hbm [thread:$0]  %s740_s27, 256, %s742_s30, [#allocation4], %s1210_s2, %s1210_s2, %s1211_s4  }
  0xe2   :  { %1201 = dma.done.wait [#allocation4], 256  }
  0xe3   :  { %1202 = vsyncadd [#allocation4], 4294967040 }
  0xe4   :  { %752 = vsyncpa [#allocation3], 1 }
  0xe5   :  { %753 = vsyncpa [#allocation6], 1 }
  0xe6   :  { %754 = vsyncpa [#allocation4], 1 }

</bundles_post_ra>
